<compile_context>
chip_gen: v5e
topology: v5e:2x2
jax: 0.10.0
libtpu: 0.0.40
codegen_flags: <defaults>
</compile_context>

<pallas_src>
import functools

import jax
import jax.numpy as jnp
from jax.experimental import pallas as pl
from jax.experimental.pallas import tpu as pltpu

LANE = 128
SUBLANE = 8


def _round_up(x, m):
    return ((x + m - 1) // m) * m


def _cdiv(a, b):
    return -(-a // b)


def qnetwork_kernel(x_ref, w1_ref, b1_ref, w2_ref, b2_ref, w3_ref, b3_ref, o_ref):
    """Fused feature-major forward for one batch tile.

    x_ref: (S, tb); wN_ref: (outN_pad, inN_pad); bN_ref: (outN_pad, 1); o_ref: (A_pad, tb).
    """
    x = x_ref[...]
    h1 = jnp.dot(w1_ref[...], x, preferred_element_type=jnp.float32) + b1_ref[...]
    h1 = jnp.maximum(h1, 0.0)
    h2 = (
        jnp.dot(w2_ref[...], h1.astype(w2_ref.dtype), preferred_element_type=jnp.float32)
        + b2_ref[...]
    )
    h2 = jnp.maximum(h2, 0.0)
    out = (
        jnp.dot(w3_ref[...], h2.astype(w3_ref.dtype), preferred_element_type=jnp.float32)
        + b3_ref[...]
    )
    o_ref[...] = out.astype(o_ref.dtype)


def prepare_params(params, compute_dtype=jnp.float32):
    """One-time preprocessing: transpose to (out, in), zero-pad, cast.

    Runs once and is reused across forward calls, so no per-call pad/cast/transpose
    HBM traffic for the weights.  Padding with zeros is exact.
    """
    w1, b1, w2, b2, w3, b3 = (params[k] for k in ("w1", "b1", "w2", "b2", "w3", "b3"))
    S, H1 = w1.shape
    H2 = w2.shape[1]
    A = w3.shape[1]
    H1p, H2p = _round_up(H1, LANE), _round_up(H2, LANE)
    Ap = _round_up(A, SUBLANE)  # sublane-pad only; keeps output writeback tiny

    def pad_t(w, rows, cols):  # (in, out) -> transposed + zero-padded (rows, cols)
        wt = w.T
        return jnp.pad(wt, ((0, rows - wt.shape[0]), (0, cols - wt.shape[1])))

    def pad_b(b, rows):
        bt = b.reshape(-1, 1)
        return jnp.pad(bt, ((0, rows - bt.shape[0]), (0, 0)))

    return {
        "w1t": pad_t(w1, H1p, S).astype(compute_dtype),
        "w2t": pad_t(w2, H2p, H1p).astype(compute_dtype),
        "w3t": pad_t(w3, Ap, H2p).astype(compute_dtype),
        "b1t": pad_b(b1, H1p).astype(jnp.float32),
        "b2t": pad_b(b2, H2p).astype(jnp.float32),
        "b3t": pad_b(b3, Ap).astype(jnp.float32),
    }


@functools.partial(jax.jit, static_argnames=("action_size", "tile_b", "min_grid"))
def qnetwork_forward(state, prepared, *, action_size=None, tile_b=2048, min_grid=2):
    """state: (B, state_size) f32.  prepared: output of prepare_params.  Returns (B, A)."""
    w1t, b1t = prepared["w1t"], prepared["b1t"]
    w2t, b2t = prepared["w2t"], prepared["b2t"]
    w3t, b3t = prepared["w3t"], prepared["b3t"]
    compute_dtype = w1t.dtype

    B, S = state.shape
    H1p = w1t.shape[0]
    H2p = w2t.shape[0]
    Ap = w3t.shape[0]
    A = Ap if action_size is None else action_size

    # Adaptive batch tiling: lane-dense tiles (multiple of 128), minimal batch padding,
    # and >= min_grid tiles when the batch is big enough so v7x's two TCs both get work.
    n_tiles = max(_cdiv(B, tile_b), min_grid if B >= min_grid * LANE else 1)
    tb = _round_up(_cdiv(B, n_tiles), LANE)
    Bp = tb * n_tiles

    # Feature-major input: one fused transpose + pad + cast pass (batch = lane dim).
    xT = jnp.pad(state.T.astype(compute_dtype), ((0, 0), (0, Bp - B)))

    itemsize = jnp.dtype(compute_dtype).itemsize
    flops = 2 * Bp * (S * H1p + H1p * H2p + H2p * Ap)
    bytes_accessed = (
        S * Bp * itemsize
        + (H1p * S + H2p * H1p + Ap * H2p) * itemsize
        + (H1p + H2p + Ap) * 4
        + Ap * Bp * 4
    )

    # Weights/biases stay resident in VMEM across grid steps (constant index_map).
    resident = lambda a: pl.BlockSpec(a.shape, lambda i: (0,) * a.ndim)

    outT = pl.pallas_call(
        qnetwork_kernel,
        out_shape=jax.ShapeDtypeStruct((Ap, Bp), jnp.float32),
        grid=(n_tiles,),
        in_specs=[
            pl.BlockSpec((S, tb), lambda i: (0, i)),  # lane-dense state tile
            resident(w1t), resident(b1t),
            resident(w2t), resident(b2t),
            resident(w3t), resident(b3t),
        ],
        out_specs=pl.BlockSpec((Ap, tb), lambda i: (0, i)),  # (A_pad, tb): lane-dense, tiny
        compiler_params=pltpu.CompilerParams(dimension_semantics=("parallel",)),
        cost_estimate=pl.CostEstimate(
            flops=flops, transcendentals=0, bytes_accessed=bytes_accessed
        ),
    )(xT, w1t, b1t, w2t, b2t, w3t, b3t)

    return outT[:A, :B].T  # (B, A)


def init_params(key, state_size, action_size, fc1_units=64, fc2_units=64):
    """Deterministic init mirroring PyTorch nn.Linear default (uniform +/- 1/sqrt(fan_in))."""
    keys = jax.random.split(key, 6)

    def linear(kw, kb, fan_in, fan_out):
        bound = 1.0 / jnp.sqrt(jnp.float32(fan_in))
        w = jax.random.uniform(kw, (fan_in, fan_out), jnp.float32, -bound, bound)
        b = jax.random.uniform(kb, (1, fan_out), jnp.float32, -bound, bound)
        return w, b

    w1, b1 = linear(keys[0], keys[1], state_size, fc1_units)
    w2, b2 = linear(keys[2], keys[3], fc1_units, fc2_units)
    w3, b3 = linear(keys[4], keys[5], fc2_units, action_size)
    return {"w1": w1, "b1": b1, "w2": w2, "b2": b2, "w3": w3, "b3": b3}


if __name__ == "__main__":
    key = jax.random.PRNGKey(0)
    k_param, k_state = jax.random.split(key)

    batch, state_size, action_size = 8, 8, 4
    params = init_params(k_param, state_size, action_size, fc1_units=64, fc2_units=64)
    state = jax.random.normal(k_state, (batch, state_size), jnp.float32)

    # --- f32 path (default; strict check against pure-JAX reference of the same math) ---
    prep_f32 = prepare_params(params, jnp.float32)
    out = jax.block_until_ready(
        qnetwork_forward(state, prep_f32, action_size=action_size)
    )
    h1 = jnp.maximum(state @ params["w1"] + params["b1"], 0.0)
    h2 = jnp.maximum(h1 @ params["w2"] + params["b2"], 0.0)
    ref = h2 @ params["w3"] + params["b3"]
    assert out.shape == (batch, action_size)
    assert jnp.allclose(out, ref, atol=1e-5, rtol=1e-4)

    # --- bf16 weight/activation path (v6e/v7x); f32 accumulation, loose tolerance ---
    prep_bf16 = prepare_params(params, jnp.bfloat16)
    out_bf16 = jax.block_until_ready(
        qnetwork_forward(state, prep_bf16, action_size=action_size)
    )
    xb = state.astype(jnp.bfloat16)
    h1b = jnp.maximum(
        jnp.dot(xb, params["w1"].astype(jnp.bfloat16), preferred_element_type=jnp.float32)
        + params["b1"], 0.0)
    h2b = jnp.maximum(
        jnp.dot(h1b.astype(jnp.bfloat16), params["w2"].astype(jnp.bfloat16),
                preferred_element_type=jnp.float32) + params["b2"], 0.0)
    refb = (jnp.dot(h2b.astype(jnp.bfloat16), params["w3"].astype(jnp.bfloat16),
                    preferred_element_type=jnp.float32) + params["b3"])
    assert jnp.allclose(out_bf16, refb, atol=2e-2, rtol=2e-2)

    print("KERNEL_OK")
</pallas_src>

<mosaic_0001>
module attributes {stable_mosaic.version = 11 : i64} {
  func.func @qnetwork_kernel(%arg0: i32, %arg1: memref<8x128xf32, #tpu.memory_space<vmem>>, %arg2: memref<128x8xf32, #tpu.memory_space<vmem>>, %arg3: memref<128x1xf32, #tpu.memory_space<vmem>>, %arg4: memref<128x128xf32, #tpu.memory_space<vmem>>, %arg5: memref<128x1xf32, #tpu.memory_space<vmem>>, %arg6: memref<8x128xf32, #tpu.memory_space<vmem>>, %arg7: memref<8x1xf32, #tpu.memory_space<vmem>>, %arg8: memref<8x128xf32, #tpu.memory_space<vmem>>) attributes {dimension_semantics = [#tpu.dimension_semantics<parallel>], iteration_bounds = array<i64: 1>, scalar_prefetch = 0 : i64, scratch_operands = 0 : i64, tpu.core_type = #tpu.core_type<tc>, window_params = [{transform_indices = @transform_0, window_bounds = array<i64: 8, 128>}, {pipeline_mode = #tpu.pipeline_mode<synchronous>, transform_indices = @transform_1, window_bounds = array<i64: 128, 8>}, {pipeline_mode = #tpu.pipeline_mode<synchronous>, transform_indices = @transform_2, window_bounds = array<i64: 128, 1>}, {pipeline_mode = #tpu.pipeline_mode<synchronous>, transform_indices = @transform_3, window_bounds = array<i64: 128, 128>}, {pipeline_mode = #tpu.pipeline_mode<synchronous>, transform_indices = @transform_4, window_bounds = array<i64: 128, 1>}, {pipeline_mode = #tpu.pipeline_mode<synchronous>, transform_indices = @transform_5, window_bounds = array<i64: 8, 128>}, {pipeline_mode = #tpu.pipeline_mode<synchronous>, transform_indices = @transform_6, window_bounds = array<i64: 8, 1>}, {transform_indices = @transform_7, window_bounds = array<i64: 8, 128>}]} {
    %c0 = arith.constant 0 : index
    %c0_0 = arith.constant 0 : index
    %0 = vector.load %arg1[%c0, %c0_0] : memref<8x128xf32, #tpu.memory_space<vmem>>, vector<8x128xf32>
    %c0_1 = arith.constant 0 : index
    %c0_2 = arith.constant 0 : index
    %1 = vector.load %arg2[%c0_1, %c0_2] : memref<128x8xf32, #tpu.memory_space<vmem>>, vector<128x8xf32>
    %cst = arith.constant dense<0.000000e+00> : vector<128x128xf32>
    %2 = tpu.matmul %1, %0, %cst {dimension_numbers = #tpu.dot_dimension_numbers<[1], [0], [0], [1], [0, 0, 1, 1], [], []>} : vector<128x8xf32>, vector<8x128xf32>, vector<128x128xf32> -> vector<128x128xf32>
    %c0_3 = arith.constant 0 : index
    %c0_4 = arith.constant 0 : index
    %3 = vector.load %arg3[%c0_3, %c0_4] : memref<128x1xf32, #tpu.memory_space<vmem>>, vector<128x1xf32>
    %4 = vector.broadcast %3 : vector<128x1xf32> to vector<128x128xf32>
    %5 = arith.addf %2, %4 : vector<128x128xf32>
    %cst_5 = arith.constant 0.000000e+00 : f32
    %6 = vector.broadcast %cst_5 : f32 to vector<128x128xf32>
    %7 = arith.maximumf %5, %6 : vector<128x128xf32>
    %c0_6 = arith.constant 0 : index
    %c0_7 = arith.constant 0 : index
    %8 = vector.load %arg4[%c0_6, %c0_7] : memref<128x128xf32, #tpu.memory_space<vmem>>, vector<128x128xf32>
    %cst_8 = arith.constant dense<0.000000e+00> : vector<128x128xf32>
    %9 = tpu.matmul %8, %7, %cst_8 {dimension_numbers = #tpu.dot_dimension_numbers<[1], [0], [0], [1], [0, 0, 1, 1], [], []>} : vector<128x128xf32>, vector<128x128xf32>, vector<128x128xf32> -> vector<128x128xf32>
    %c0_9 = arith.constant 0 : index
    %c0_10 = arith.constant 0 : index
    %10 = vector.load %arg5[%c0_9, %c0_10] : memref<128x1xf32, #tpu.memory_space<vmem>>, vector<128x1xf32>
    %11 = vector.broadcast %10 : vector<128x1xf32> to vector<128x128xf32>
    %12 = arith.addf %9, %11 : vector<128x128xf32>
    %cst_11 = arith.constant 0.000000e+00 : f32
    %13 = vector.broadcast %cst_11 : f32 to vector<128x128xf32>
    %14 = arith.maximumf %12, %13 : vector<128x128xf32>
    %c0_12 = arith.constant 0 : index
    %c0_13 = arith.constant 0 : index
    %15 = vector.load %arg6[%c0_12, %c0_13] : memref<8x128xf32, #tpu.memory_space<vmem>>, vector<8x128xf32>
    %cst_14 = arith.constant dense<0.000000e+00> : vector<8x128xf32>
    %16 = tpu.matmul %15, %14, %cst_14 {dimension_numbers = #tpu.dot_dimension_numbers<[1], [0], [0], [1], [0, 0, 1, 1], [], []>} : vector<8x128xf32>, vector<128x128xf32>, vector<8x128xf32> -> vector<8x128xf32>
    %c0_15 = arith.constant 0 : index
    %c0_16 = arith.constant 0 : index
    %17 = vector.load %arg7[%c0_15, %c0_16] : memref<8x1xf32, #tpu.memory_space<vmem>>, vector<8x1xf32>
    %18 = vector.broadcast %17 : vector<8x1xf32> to vector<8x128xf32>
    %19 = arith.addf %16, %18 : vector<8x128xf32>
    %c0_17 = arith.constant 0 : index
    %c0_18 = arith.constant 0 : index
    %20 = vector.load %arg8[%c0_17, %c0_18] : memref<8x128xf32, #tpu.memory_space<vmem>>, vector<8x128xf32>
    tpu.vector_store %arg8[%c0_17, %c0_18], %19 {strides = array<i32>} : memref<8x128xf32, #tpu.memory_space<vmem>>, vector<8x128xf32>,
    return
  }
  func.func @transform_0(%arg0: i32) -> (i32, i32) {
    %c0_i32 = arith.constant 0 : i32
    %c0_i32_0 = arith.constant 0 : i32
    return %c0_i32, %arg0 : i32, i32
  }
  func.func @transform_1(%arg0: i32) -> (i32, i32) {
    %c0_i32 = arith.constant 0 : i32
    %c0_i32_0 = arith.constant 0 : i32
    %c0_i32_1 = arith.constant 0 : i32
    return %c0_i32, %c0_i32_0 : i32, i32
  }
  func.func @transform_2(%arg0: i32) -> (i32, i32) {
    %c0_i32 = arith.constant 0 : i32
    %c0_i32_0 = arith.constant 0 : i32
    %c0_i32_1 = arith.constant 0 : i32
    return %c0_i32, %c0_i32_0 : i32, i32
  }
  func.func @transform_3(%arg0: i32) -> (i32, i32) {
    %c0_i32 = arith.constant 0 : i32
    %c0_i32_0 = arith.constant 0 : i32
    %c0_i32_1 = arith.constant 0 : i32
    return %c0_i32, %c0_i32_0 : i32, i32
  }
  func.func @transform_4(%arg0: i32) -> (i32, i32) {
    %c0_i32 = arith.constant 0 : i32
    %c0_i32_0 = arith.constant 0 : i32
    %c0_i32_1 = arith.constant 0 : i32
    return %c0_i32, %c0_i32_0 : i32, i32
  }
  func.func @transform_5(%arg0: i32) -> (i32, i32) {
    %c0_i32 = arith.constant 0 : i32
    %c0_i32_0 = arith.constant 0 : i32
    %c0_i32_1 = arith.constant 0 : i32
    return %c0_i32, %c0_i32_0 : i32, i32
  }
  func.func @transform_6(%arg0: i32) -> (i32, i32) {
    %c0_i32 = arith.constant 0 : i32
    %c0_i32_0 = arith.constant 0 : i32
    %c0_i32_1 = arith.constant 0 : i32
    return %c0_i32, %c0_i32_0 : i32, i32
  }
  func.func @transform_7(%arg0: i32) -> (i32, i32) {
    %c0_i32 = arith.constant 0 : i32
    %c0_i32_0 = arith.constant 0 : i32
    return %c0_i32, %arg0 : i32, i32
  }
}

</mosaic_0001>

<bundles_post_ra>
// kernel: qnetwork_forward.1
= control target key start
LH: loop header
LB: loop body
LE: loop exit
PB: predicated region body
PF: predicated region fallthrough
CT: control target
= control target key end

     0   :  { %v531_v0 = vmov 0   ;;  %vm139_vm0 = vcmask 64512   ;;  %s810_s2 = inlined_call_operand.vmem [shape: f32[128,1], index: 2, kind: input, shape index: {}]   ;;  %s811_s0 = inlined_call_operand.vmem [shape: f32[8,128], index: 0, kind: input, shape index: {}]   ;;  %s812_s1 = inlined_call_operand.vmem [shape: f32[128,8], index: 1, kind: input, shape index: {}]   ;;  %s813_s4 = inlined_call_operand.vmem [shape: f32[128,1], index: 4, kind: input, shape index: {}]   ;;  %s814_s6 = inlined_call_operand.vmem [shape: f32[8,1], index: 6, kind: input, shape index: {}]   ;;  %s815_s3 = inlined_call_operand.vmem [shape: f32[128,128], index: 3, kind: input, shape index: {}]   ;;  %s816_s5 = inlined_call_operand.vmem [shape: f32[8,128], index: 5, kind: input, shape index: {}]   ;;  %s817_s7 = inlined_call_operand.vmem [shape: f32[8,128], index: 7, kind: output, shape index: {}]  }
   0x1   :  { %529 = vset.pattern.permute.xlu1 %v531_v0  ;;  %528 = vset.pattern.permute.xlu0 %v531_v0  ;;  %v58_v1 = vld [vmem:[%s810_s2 + $0x78] sm:$0xff]  ;;  %v56_v2 = vld [vmem:[%s810_s2 + $0x68] sm:$0xff]  ;;  %v26_v3 = vld [vmem:[%s811_s0] sm:$0xff] }
   0x2   :  { %136 = vperm.xlu0 %528, %v58_v1   ;;  %126 = vperm.xlu1 %529, %v56_v2   ;;  %v27_v4 = vld [vmem:[%s812_s1] sm:$0xff]  ;;  %v38_v5 = vld [vmem:[%s812_s1 + $0x58] sm:$0xff]  ;;  %v57_v7 = vld [vmem:[%s810_s2 + $0x70] sm:$0xff] }
   0x3   :  { %203 = vmatpush.msra.mxu0 %v26_v3  ;;  %510 = vmatpush.msra.mxu2 %v26_v3  ;;  %v54_v6 = vld [vmem:[%s810_s2 + $0x58] sm:$0xff]  ;;  %v55_v8 = vld [vmem:[%s810_s2 + $0x60] sm:$0xff]  ;;  %v28_v9 = vld [vmem:[%s812_s1 + $0x8] sm:$0xff] }
   0x4   :  { %494 = vmatmul.msk.f32.vlgmr.msra.gmra.mxu0 %vm139_vm0, %v27_v4  ;;  %505 = vmatmul.msk.f32.vlgmr.msra.gmra.mxu2 %vm139_vm0, %v38_v5  ;;  %v39_v10 = vld [vmem:[%s812_s1 + $0x60] sm:$0xff]  ;;  %v53_v11 = vld [vmem:[%s810_s2 + $0x50] sm:$0xff]  ;;  %v52_v12 = vld [vmem:[%s810_s2 + $0x48] sm:$0xff] }
   0x5   :  { %530 = vset.pattern.permute.xlu2 %v531_v0  ;;  %v51_v13 = vld [vmem:[%s810_s2 + $0x40] sm:$0xff]  ;;  %v29_v14 = vld [vmem:[%s812_s1 + $0x10] sm:$0xff]  ;;  %v40_v15 = vld [vmem:[%s812_s1 + $0x68] sm:$0xff] }
   0x6   :  { %116 = vperm.xlu2 %530, %v54_v6   ;;  %v50_v16 = vld [vmem:[%s810_s2 + $0x38] sm:$0xff]  ;;  %v49_v17 = vld [vmem:[%s810_s2 + $0x30] sm:$0xff]  ;;  %v48_v18 = vld [vmem:[%s810_s2 + $0x28] sm:$0xff] }
   0x7   :  { %v30_v19 = vld [vmem:[%s812_s1 + $0x18] sm:$0xff]  ;;  %v41_v20 = vld [vmem:[%s812_s1 + $0x70] sm:$0xff]  ;;  %v47_v21 = vld [vmem:[%s810_s2 + $0x20] sm:$0xff] }
   0x8   :  { %v46_v22 = vld [vmem:[%s810_s2 + $0x18] sm:$0xff]  ;;  %v45_v23 = vld [vmem:[%s810_s2 + $0x10] sm:$0xff]  ;;  %v31_v24 = vld [vmem:[%s812_s1 + $0x20] sm:$0xff] }
   0x9   :  { %v42_v25 = vld [vmem:[%s812_s1 + $0x78] sm:$0xff]  ;;  %v44_v26 = vld [vmem:[%s810_s2 + $0x8] sm:$0xff]  ;;  %v43_v28 = vld [vmem:[%s810_s2] sm:$0xff] }
   0xa   :  { %131 = vperm.xlu0 %528, %v57_v7   ;;  %121 = vperm.xlu1 %529, %v55_v8   ;;  %v300_v27 = vld [vmem:[%s813_s4 + $0x78] sm:$0xff]  ;;  %v32_v29 = vld [vmem:[%s812_s1 + $0x28] sm:$0xff]  ;;  %v299_v30 = vld [vmem:[%s813_s4 + $0x70] sm:$0xff] }
   0xb   :  { %v297_v31 = vld [vmem:[%s813_s4 + $0x60] sm:$0xff]  ;;  %v298_v32 = vld [vmem:[%s813_s4 + $0x68] sm:$0xff]  ;;  %v33_v33 = vld [vmem:[%s812_s1 + $0x30] sm:$0xff] }
   0xc   :  { %495 = vmatmul.msk.f32.gmra.mxu0 %vm139_vm0, %v28_v9  ;;  %506 = vmatmul.msk.f32.gmra.mxu2 %vm139_vm0, %v39_v10  ;;  %v296_v34 = vld [vmem:[%s813_s4 + $0x58] sm:$0xff]  ;;  %v294_v35 = vld [vmem:[%s813_s4 + $0x48] sm:$0xff]  ;;  %v295_v36 = vld [vmem:[%s813_s4 + $0x50] sm:$0xff] }
   0xd   :  { %v34_v37 = vld [vmem:[%s812_s1 + $0x38] sm:$0xff]  ;;  %v293_v38 = vld [vmem:[%s813_s4 + $0x40] sm:$0xff]  ;;  %v291_v39 = vld [vmem:[%s813_s4 + $0x30] sm:$0xff] }
   0xe   :  { %111 = vperm.xlu2 %530, %v53_v11   ;;  %v292_v40 = vld [vmem:[%s813_s4 + $0x38] sm:$0xff]  ;;  %v35_v41 = vld [vmem:[%s812_s1 + $0x40] sm:$0xff]  ;;  %v290_v42 = vld [vmem:[%s813_s4 + $0x28] sm:$0xff] }
   0xf   :  { %v288_v43 = vld [vmem:[%s813_s4 + $0x18] sm:$0xff]  ;;  %v289_v44 = vld [vmem:[%s813_s4 + $0x20] sm:$0xff]  ;;  %v36_v45 = vld [vmem:[%s812_s1 + $0x48] sm:$0xff] }
  0x10   :  { %v287_v46 = vld [vmem:[%s813_s4 + $0x10] sm:$0xff]  ;;  %v285_v47 = vld [vmem:[%s813_s4] sm:$0xff]  ;;  %v286_v48 = vld [vmem:[%s813_s4 + $0x8] sm:$0xff] }
  0x11   :  { %v37_v49 = vld [vmem:[%s812_s1 + $0x50] sm:$0xff]  ;;  %v463_v50 = vld [vmem:[%s814_s6] sm:$0xff] }
  0x12   :  { %106 = vperm.xlu0 %528, %v52_v12   ;;  %101 = vperm.xlu1 %529, %v51_v13  }
  0x14   :  { %496 = vmatmul.msk.f32.gmra.mxu0 %vm139_vm0, %v29_v14  ;;  %507 = vmatmul.msk.f32.gmra.mxu2 %vm139_vm0, %v40_v15 }
  0x16   :  { %96 = vperm.xlu2 %530, %v50_v16  }
  0x1a   :  { %91 = vperm.xlu0 %528, %v49_v17   ;;  %86 = vperm.xlu1 %529, %v48_v18  }
  0x1c   :  { %497 = vmatmul.msk.f32.gmra.mxu0 %vm139_vm0, %v30_v19  ;;  %508 = vmatmul.msk.f32.gmra.mxu2 %vm139_vm0, %v41_v20 }
  0x1e   :  { %81 = vperm.xlu2 %530, %v47_v21  }
  0x22   :  { %76 = vperm.xlu0 %528, %v46_v22   ;;  %71 = vperm.xlu1 %529, %v45_v23  }
  0x24   :  { %498 = vmatmul.msk.f32.gmra.mxu0 %vm139_vm0, %v31_v24  ;;  %509 = vmatmul.msk.f32.gmra.mxu2 %vm139_vm0, %v42_v25 }
  0x26   :  { %66 = vperm.xlu2 %530, %v44_v26  }
  0x2a   :  { %378 = vperm.xlu1 %529, %v300_v27   ;;  %61 = vperm.xlu0 %528, %v43_v28  }
  0x2c   :  { %499 = vmatmul.msk.f32.gmra.mxu0 %vm139_vm0, %v32_v29 }
  0x2e   :  { %373 = vperm.xlu2 %530, %v299_v30  }
  0x32   :  { %363 = vperm.xlu1 %529, %v297_v31   ;;  %368 = vperm.xlu0 %528, %v298_v32  }
  0x34   :  { %500 = vmatmul.msk.f32.gmra.mxu0 %vm139_vm0, %v33_v33 }
  0x36   :  { %358 = vperm.xlu2 %530, %v296_v34  }
  0x3a   :  { %348 = vperm.xlu1 %529, %v294_v35   ;;  %353 = vperm.xlu0 %528, %v295_v36  }
  0x3c   :  { %501 = vmatmul.msk.f32.gmra.mxu0 %vm139_vm0, %v34_v37 }
  0x3e   :  { %343 = vperm.xlu2 %530, %v293_v38  }
  0x42   :  { %333 = vperm.xlu1 %529, %v291_v39   ;;  %338 = vperm.xlu0 %528, %v292_v40  }
  0x44   :  { %502 = vmatmul.msk.f32.gmra.mxu0 %vm139_vm0, %v35_v41 }
  0x46   :  { %328 = vperm.xlu2 %530, %v290_v42  }
  0x4a   :  { %318 = vperm.xlu1 %529, %v288_v43   ;;  %323 = vperm.xlu0 %528, %v289_v44  }
  0x4c   :  { %503 = vmatmul.msk.f32.gmra.mxu0 %vm139_vm0, %v36_v45 }
  0x4e   :  { %313 = vperm.xlu2 %530, %v287_v46  }
  0x52   :  { %303 = vperm.xlu1 %529, %v285_v47   ;;  %308 = vperm.xlu0 %528, %v286_v48  }
  0x54   :  { %504 = vmatmul.msk.f32.gmra.mxu0 %vm139_vm0, %v37_v49 }
  0x56   :  { %466 = vperm.xlu2 %530, %v463_v50  }
  0x60   :  { %v117_v9 = vpop.permute.xlu2 %116 }
  0x68   :  { %v112_v15 = vpop.permute.xlu2 %111 }
  0x70   :  { %v97_v20 = vpop.permute.xlu2 %96 }
  0x74   :  { %v137_v58 = vpop.permute.xlu0 %136  ;;  %v127_v59 = vpop.permute.xlu1 %126 }
  0x78   :  { %v82_v28 = vpop.permute.xlu2 %81 }
  0x7c   :  { %v132_v62 = vpop.permute.xlu0 %131  ;;  %v122_v3 = vpop.permute.xlu1 %121 }
  0x80   :  { %v67_v41 = vpop.permute.xlu2 %66 }
  0x81   :  { %v738_v51 = vpop.f32.mrf.mxu0 }
  0x84   :  { %v107_v17 = vpop.permute.xlu0 %106  ;;  %v102_v18 = vpop.permute.xlu1 %101 }
  0x87   :  { %v238_v52 = vpop.f32.mrf.mxu2 }
  0x88   :  { %v239_v10 = vadd.f32 %v238_v52, %v117_v9  ;;  %v269_v52 = vld [vmem:[%s815_s3] sm:$0xff] }
  0x89   :  { %v740_v53 = vpop.f32.mrf.mxu0 }
  0x8a   :  { %v264_v13 = vmax.f32 %v239_v10, 0.0  ;;  %v209_v45 = vadd.f32 %v740_v53, %v67_v41  ;;  %v277_v53 = vld [vmem:[%s815_s3 + $0x40] sm:$0xff] }
  0x8c   :  { %v92_v21 = vpop.permute.xlu0 %91  ;;  %v87_v25 = vpop.permute.xlu1 %86  ;;  %v254_v49 = vmax.f32 %v209_v45, 0.0 }
  0x8f   :  { %v241_v54 = vpop.f32.mrf.mxu2 }
  0x90   :  { %v242_v5 = vadd.f32 %v241_v54, %v122_v3  ;;  %v278_v54 = vld [vmem:[%s815_s3 + $0x48] sm:$0xff] }
  0x91   :  { %v742_v55 = vpop.f32.mrf.mxu0 }
  0x92   :  { %v265_v11 = vmax.f32 %v242_v5, 0.0 }
  0x94   :  { %v77_v31 = vpop.permute.xlu0 %76  ;;  %v72_v38 = vpop.permute.xlu1 %71 }
  0x95   :  { %v212_v42 = vadd.f32 %v742_v55, %v72_v38  ;;  %v271_v55 = vld [vmem:[%s815_s3 + $0x10] sm:$0xff] }
  0x97   :  { %v244_v56 = vpop.f32.mrf.mxu2  ;;  %v255_v47 = vmax.f32 %v212_v42, 0.0 }
  0x98   :  { %v245_v1 = vadd.f32 %v244_v56, %v127_v59  ;;  %v279_v56 = vld [vmem:[%s815_s3 + $0x50] sm:$0xff]  ;;  %v273_v59 = vld [vmem:[%s815_s3 + $0x20] sm:$0xff] }
  0x99   :  { %v744_v57 = vpop.f32.mrf.mxu0 }
  0x9a   :  { %v266_v8 = vmax.f32 %v245_v1, 0.0  ;;  %v215_v39 = vadd.f32 %v744_v57, %v77_v31  ;;  %v272_v57 = vld [vmem:[%s815_s3 + $0x18] sm:$0xff] }
  0x9b   :  { %v276_v1 = vld [vmem:[%s815_s3 + $0x38] sm:$0xff] }
  0x9c   :  { %v62_v44 = vpop.permute.xlu0 %61  ;;  %v256_v46 = vmax.f32 %v215_v39, 0.0 }
  0x9d   :  { %v206_v48 = vadd.f32 %v738_v51, %v62_v44  ;;  %v270_v51 = vld [vmem:[%s815_s3 + $0x8] sm:$0xff] }
  0x9f   :  { %v247_v60 = vpop.f32.mrf.mxu2  ;;  %v253_v50 = vmax.f32 %v206_v48, 0.0 }
  0xa0   :  { %v248_v63 = vadd.f32 %v247_v60, %v132_v62  ;;  %v281_v60 = vld [vmem:[%s815_s3 + $0x60] sm:$0xff]  ;;  %v282_v62 = vld [vmem:[%s815_s3 + $0x68] sm:$0xff] }
  0xa1   :  { %v217_v61 = vpop.f32.mrf.mxu0 }
  0xa2   :  { %v267_v6 = vmax.f32 %v248_v63, 0.0  ;;  %v218_v36 = vadd.f32 %v217_v61, %v82_v28  ;;  %v274_v61 = vld [vmem:[%s815_s3 + $0x28] sm:$0xff]  ;;  %v275_v63 = vld [vmem:[%s815_s3 + $0x30] sm:$0xff] }
  0xa4   :  { %v257_v43 = vmax.f32 %v218_v36, 0.0 }
  0xa7   :  { %v250_v0 = vpop.f32.mrf.mxu2 }
  0xa8   :  { %v251_v2 = vadd.f32 %v250_v0, %v137_v58  ;;  %v280_v58 = vld [vmem:[%s815_s3 + $0x58] sm:$0xff]  ;;  %v283_v0 = vld [vmem:[%s815_s3 + $0x70] sm:$0xff] }
  0xa9   :  { %v220_v4 = vpop.f32.mrf.mxu0 }
  0xaa   :  { %v268_v7 = vmax.f32 %v251_v2, 0.0  ;;  %v221_v34 = vadd.f32 %v220_v4, %v87_v25  ;;  %v284_v2 = vld [vmem:[%s815_s3 + $0x78] sm:$0xff] }
  0xac   :  { %381 = vmatpush.msra.mxu1 %v268_v7  ;;  %511 = vmatpush.msra.mxu3 %v268_v7  ;;  %v258_v40 = vmax.f32 %v221_v34, 0.0 }
  0xae   :  { %382 = vmatpush.msra.mxu1 %v267_v6  ;;  %512 = vmatpush.msra.mxu3 %v267_v6 }
  0xb0   :  { %383 = vmatpush.msra.mxu1 %v266_v8  ;;  %513 = vmatpush.msra.mxu3 %v266_v8 }
  0xb1   :  { %v223_v12 = vpop.f32.mrf.mxu0 }
  0xb2   :  { %384 = vmatpush.msra.mxu1 %v265_v11  ;;  %514 = vmatpush.msra.mxu3 %v265_v11  ;;  %v224_v32 = vadd.f32 %v223_v12, %v92_v21  ;;  %v379_v12 = vpop.permute.xlu1 %378 }
  0xb4   :  { %385 = vmatpush.msra.mxu1 %v264_v13  ;;  %515 = vmatpush.msra.mxu3 %v264_v13  ;;  %v259_v37 = vmax.f32 %v224_v32, 0.0 }
  0xb9   :  { %v226_v14 = vpop.f32.mrf.mxu0 }
  0xba   :  { %v227_v29 = vadd.f32 %v226_v14, %v97_v20  ;;  %v374_v14 = vpop.permute.xlu2 %373 }
  0xbc   :  { %v260_v35 = vmax.f32 %v227_v29, 0.0 }
  0xc1   :  { %v229_v16 = vpop.f32.mrf.mxu0 }
  0xc2   :  { %v230_v26 = vadd.f32 %v229_v16, %v102_v18  ;;  %v369_v16 = vpop.permute.xlu0 %368  ;;  %v359_v20 = vpop.permute.xlu2 %358 }
  0xc4   :  { %v261_v33 = vmax.f32 %v230_v26, 0.0 }
  0xc9   :  { %v232_v19 = vpop.f32.mrf.mxu0 }
  0xca   :  { %v233_v23 = vadd.f32 %v232_v19, %v107_v17  ;;  %v364_v17 = vpop.permute.xlu1 %363  ;;  %v354_v21 = vpop.permute.xlu0 %353 }
  0xcb   :  { %v344_v29 = vpop.permute.xlu2 %343 }
  0xcc   :  { %v262_v30 = vmax.f32 %v233_v23, 0.0 }
  0xd1   :  { %v235_v22 = vpop.f32.mrf.mxu0 }
  0xd2   :  { %v236_v24 = vadd.f32 %v235_v22, %v112_v15  ;;  %v349_v22 = vpop.permute.xlu1 %348  ;;  %v339_v32 = vpop.permute.xlu0 %338 }
  0xd4   :  { %v263_v27 = vmax.f32 %v236_v24, 0.0 }
  0xd6   :  { %386 = vmatpush.msra.mxu1 %v263_v27  ;;  %516 = vmatpush.msra.mxu3 %v263_v27 }
  0xd8   :  { %387 = vmatpush.msra.mxu1 %v262_v30  ;;  %517 = vmatpush.msra.mxu3 %v262_v30 }
  0xda   :  { %388 = vmatpush.msra.mxu1 %v261_v33  ;;  %518 = vmatpush.msra.mxu3 %v261_v33 }
  0xdc   :  { %389 = vmatpush.msra.mxu1 %v260_v35  ;;  %519 = vmatpush.msra.mxu3 %v260_v35  ;;  %v334_v35 = vpop.permute.xlu1 %333 }
  0xde   :  { %390 = vmatpush.msra.mxu1 %v259_v37  ;;  %520 = vmatpush.msra.mxu3 %v259_v37 }
  0xe0   :  { %391 = vmatpush.msra.mxu1 %v258_v40  ;;  %521 = vmatpush.msra.mxu3 %v258_v40 }
  0xe2   :  { %392 = vmatpush.msra.mxu1 %v257_v43  ;;  %522 = vmatpush.msra.mxu3 %v257_v43  ;;  %v329_v43 = vpop.permute.xlu2 %328 }
  0xe4   :  { %393 = vmatpush.msra.mxu1 %v256_v46  ;;  %523 = vmatpush.msra.mxu3 %v256_v46  ;;  %v324_v46 = vpop.permute.xlu0 %323 }
  0xe6   :  { %394 = vmatpush.msra.mxu1 %v255_v47  ;;  %524 = vmatpush.msra.mxu3 %v255_v47 }
  0xe8   :  { %395 = vmatpush.msra.mxu1 %v254_v49  ;;  %525 = vmatpush.msra.mxu3 %v254_v49  ;;  %v319_v49 = vpop.permute.xlu1 %318 }
  0xea   :  { %396 = vmatpush.msra.mxu1 %v253_v50  ;;  %526 = vmatpush.msra.mxu3 %v253_v50 }
  0xeb   :  { %397 = vmatmul.f32.vlgmr.msra.gmra.mxu1 %v269_v52  ;;  %421 = vmatmul.f32.vlgmr.msra.gmra.mxu3 %v277_v53 }
  0xf3   :  { %400 = vmatmul.f32.gmra.mxu1 %v270_v51  ;;  %424 = vmatmul.f32.gmra.mxu3 %v278_v54 }
  0xfb   :  { %403 = vmatmul.f32.gmra.mxu1 %v271_v55  ;;  %427 = vmatmul.f32.gmra.mxu3 %v279_v56  ;;  %v314_v56 = vpop.permute.xlu2 %313 }
 0x103   :  { %406 = vmatmul.f32.gmra.mxu1 %v272_v57  ;;  %430 = vmatmul.f32.gmra.mxu3 %v280_v58 }
 0x10b   :  { %409 = vmatmul.f32.gmra.mxu1 %v273_v59  ;;  %433 = vmatmul.f32.gmra.mxu3 %v281_v60  ;;  %v309_v59 = vpop.permute.xlu0 %308 }
 0x113   :  { %412 = vmatmul.f32.gmra.mxu1 %v274_v61  ;;  %436 = vmatmul.f32.gmra.mxu3 %v282_v62  ;;  %v304_v62 = vpop.permute.xlu1 %303 }
 0x11b   :  { %415 = vmatmul.f32.gmra.mxu1 %v275_v63  ;;  %439 = vmatmul.f32.gmra.mxu3 %v283_v0 }
 0x123   :  { %418 = vmatmul.f32.gmra.mxu1 %v276_v1  ;;  %442 = vmatmul.f32.gmra.mxu3 %v284_v2 }
 0x168   :  { %v798_v3 = vpop.f32.mrf.mxu1 }
 0x169   :  { %v399_v63 = vadd.f32 %v798_v3, %v304_v62 }
 0x16b   :  { %v446_v2 = vmax.f32 %v399_v63, 0.0 }
 0x16e   :  { %v422_v4 = vpop.f32.mrf.mxu3 }
 0x16f   :  { %v423_v41 = vadd.f32 %v422_v4, %v344_v29  ;;  %v462_v4 = vld [vmem:[%s816_s5] sm:$0xff] }
 0x170   :  { %v800_v5 = vpop.f32.mrf.mxu1 }
 0x171   :  { %v454_v47 = vmax.f32 %v423_v41, 0.0  ;;  %v402_v60 = vadd.f32 %v800_v5, %v309_v59 }
 0x173   :  { %v447_v1 = vmax.f32 %v402_v60, 0.0 }
 0x176   :  { %v425_v6 = vpop.f32.mrf.mxu3 }
 0x177   :  { %v426_v38 = vadd.f32 %v425_v6, %v349_v22  ;;  %v467_v6 = vpop.permute.xlu2 %466 }
 0x178   :  { %v404_v8 = vpop.f32.mrf.mxu1 }
 0x179   :  { %v455_v44 = vmax.f32 %v426_v38, 0.0  ;;  %v405_v57 = vadd.f32 %v404_v8, %v314_v56 }
 0x17b   :  { %v448_v0 = vmax.f32 %v405_v57, 0.0 }
 0x17e   :  { %v428_v7 = vpop.f32.mrf.mxu3 }
 0x17f   :  { %v429_v36 = vadd.f32 %v428_v7, %v354_v21 }
 0x180   :  { %v407_v10 = vpop.f32.mrf.mxu1 }
 0x181   :  { %v456_v42 = vmax.f32 %v429_v36, 0.0  ;;  %v408_v54 = vadd.f32 %v407_v10, %v319_v49 }
 0x183   :  { %v449_v61 = vmax.f32 %v408_v54, 0.0 }
 0x186   :  { %v431_v9 = vpop.f32.mrf.mxu3 }
 0x187   :  { %v432_v33 = vadd.f32 %v431_v9, %v359_v20 }
 0x188   :  { %v410_v13 = vpop.f32.mrf.mxu1 }
 0x189   :  { %v457_v39 = vmax.f32 %v432_v33, 0.0  ;;  %v411_v53 = vadd.f32 %v410_v13, %v324_v46 }
 0x18b   :  { %v450_v58 = vmax.f32 %v411_v53, 0.0 }
 0x18e   :  { %v434_v11 = vpop.f32.mrf.mxu3 }
 0x18f   :  { %v435_v30 = vadd.f32 %v434_v11, %v364_v17 }
 0x190   :  { %v413_v18 = vpop.f32.mrf.mxu1 }
 0x191   :  { %v458_v37 = vmax.f32 %v435_v30, 0.0  ;;  %v414_v50 = vadd.f32 %v413_v18, %v329_v43 }
 0x193   :  { %v451_v55 = vmax.f32 %v414_v50, 0.0 }
 0x196   :  { %v437_v15 = vpop.f32.mrf.mxu3 }
 0x197   :  { %v438_v27 = vadd.f32 %v437_v15, %v369_v16 }
 0x198   :  { %v416_v26 = vpop.f32.mrf.mxu1 }
 0x199   :  { %v459_v34 = vmax.f32 %v438_v27, 0.0  ;;  %v417_v48 = vadd.f32 %v416_v26, %v334_v35 }
 0x19b   :  { %v452_v51 = vmax.f32 %v417_v48, 0.0 }
 0x19e   :  { %v440_v19 = vpop.f32.mrf.mxu3 }
 0x19f   :  { %v441_v24 = vadd.f32 %v440_v19, %v374_v14 }
 0x1a0   :  { %v419_v40 = vpop.f32.mrf.mxu1 }
 0x1a1   :  { %v460_v31 = vmax.f32 %v441_v24, 0.0  ;;  %v420_v45 = vadd.f32 %v419_v40, %v339_v32 }
 0x1a3   :  { %v453_v52 = vmax.f32 %v420_v45, 0.0 }
 0x1a6   :  { %v443_v23 = vpop.f32.mrf.mxu3 }
 0x1a7   :  { %v444_v25 = vadd.f32 %v443_v23, %v379_v12 }
 0x1a9   :  { %v461_v28 = vmax.f32 %v444_v25, 0.0 }
 0x1ab   :  { %469 = vmatpush.msrb.mxu2 %v461_v28 }
 0x1ad   :  { %470 = vmatpush.msrb.mxu2 %v460_v31 }
 0x1af   :  { %471 = vmatpush.msrb.mxu2 %v459_v34 }
 0x1b1   :  { %472 = vmatpush.msrb.mxu2 %v458_v37 }
 0x1b3   :  { %473 = vmatpush.msrb.mxu2 %v457_v39 }
 0x1b5   :  { %474 = vmatpush.msrb.mxu2 %v456_v42 }
 0x1b7   :  { %475 = vmatpush.msrb.mxu2 %v455_v44 }
 0x1b9   :  { %476 = vmatpush.msrb.mxu2 %v454_v47 }
 0x1bb   :  { %477 = vmatpush.msrb.mxu2 %v453_v52 }
 0x1bd   :  { %478 = vmatpush.msrb.mxu2 %v452_v51 }
 0x1bf   :  { %479 = vmatpush.msrb.mxu2 %v451_v55 }
 0x1c1   :  { %480 = vmatpush.msrb.mxu2 %v450_v58 }
 0x1c3   :  { %481 = vmatpush.msrb.mxu2 %v449_v61 }
 0x1c5   :  { %482 = vmatpush.msrb.mxu2 %v448_v0 }
 0x1c7   :  { %483 = vmatpush.msrb.mxu2 %v447_v1 }
 0x1c9   :  { %484 = vmatpush.msrb.mxu2 %v446_v2 }
 0x1ca   :  { %485 = vmatmul.f32.vlgmr.msrb.gmra.mxu2 %v462_v4 }
 0x24d   :  { %v486_v7 = vpop.f32.mrf.mxu2 }
 0x24e   :  { %v487_v5 = vadd.f32 %v486_v7, %v467_v6 }
 0x250   :  { %489 = vst [vmem:[%s817_s7] sm:$0xff] %v487_v5 }

</bundles_post_ra>
